<compile_context>
chip_gen: v7x
topology: tpu7x:2x2x1
jax: 0.10.0
libtpu: 0.0.40
codegen_flags: <defaults>
</compile_context>

<pallas_src>
import jax
import jax.numpy as jnp
from jax.experimental import pallas as pl
from jax.experimental.pallas import tpu as pltpu


def _skip_branch_kernel(xa_ref, xb_ref, wa_ref, wb_ref, bias_ref, o_ref):
    """xa/xb: [nb, Cin, tn]; wa/wb: [Ch, Cin] (BN scale folded in);
    bias: [2, Ch, 1] f32; o: [nb, 2, Ch, tn]."""
    wa = wa_ref[...]
    wb = wb_ref[...]
    ba = bias_ref[0]                       # [Ch, 1], f32
    bb = bias_ref[1]                       # [Ch, 1], f32
    nb = o_ref.shape[0]
    for n in range(nb):                    # nb is small & static -> full unroll
        # Both 1x1 convs on the MXU, f32 accumulation; spatial on the lane axis.
        ya = jnp.dot(wa, xa_ref[n], preferred_element_type=jnp.float32)  # [Ch, tn]
        yb = jnp.dot(wb, xb_ref[n], preferred_element_type=jnp.float32)  # [Ch, tn]
        # BatchNorm (hoisted stats) == bias add; channel concat == the p axis.
        o_ref[n, 0] = (ya + ba).astype(o_ref.dtype)
        o_ref[n, 1] = (yb + bb).astype(o_ref.dtype)


def skip_branch_forward(x, w1, w2, gamma, beta, eps=1e-5,
                        compute_dtype=jnp.bfloat16,
                        target_step_elems=256 * 1024, max_nb=32):
    """x: NCHW [B, Cin, H, W]; w1/w2: [Cin, Cout//2]; gamma/beta: [Cout].

    Returns NCHW [B, Cout, H//2, W//2] in `compute_dtype`."""
    B, Cin, H, W = x.shape
    assert H % 2 == 0 and W % 2 == 0, "even spatial dims required (as in ShakeNet)"
    Ho, Wo = H // 2, W // 2
    S = Ho * Wo
    Ch = w1.shape[1]
    assert w2.shape == (Cin, Ch)
    Cout = 2 * Ch
    M = B * S

    # --- stride-2 subsamples, NCHW (no transpose, no concat) -----------------
    xa = x[:, :, ::2, ::2]                 # [B, Cin, Ho, Wo]
    xb = x[:, :, 1::2, 1::2]               # [B, Cin, Ho, Wo]

    # --- hoisted BN batch statistics (per branch, f32 accumulation) ----------
    w1f = w1.astype(jnp.float32)
    w2f = w2.astype(jnp.float32)
    colsum_a = jnp.sum(xa, axis=(0, 2, 3), dtype=jnp.float32)            # [Cin]
    colsum_b = jnp.sum(xb, axis=(0, 2, 3), dtype=jnp.float32)
    gram_a = jnp.einsum('bcij,bdij->cd', xa, xa,
                        preferred_element_type=jnp.float32)              # [Cin,Cin]
    gram_b = jnp.einsum('bcij,bdij->cd', xb, xb,
                        preferred_element_type=jnp.float32)
    mean_y = jnp.concatenate([colsum_a @ w1f, colsum_b @ w2f]) / M       # [Cout]
    ey2 = jnp.concatenate([jnp.sum((gram_a @ w1f) * w1f, axis=0),
                           jnp.sum((gram_b @ w2f) * w2f, axis=0)]) / M   # [Cout]
    # TODO(synk): single-pass E[y^2]-mean^2 can lose precision for inputs with
    # |mean| >> std; switch to a centered two-pass Gram if such inputs matter.
    var_y = jnp.maximum(ey2 - mean_y * mean_y, 0.0)    # biased variance (train BN)
    scale = gamma.astype(jnp.float32) * jax.lax.rsqrt(var_y + eps)
    bias = beta.astype(jnp.float32) - mean_y * scale
    # TODO(synk): BatchNorm2d running_mean / running_var updates (training
    # side effect) are not produced here.
    # TODO(synk): Conv2d bias terms are not modeled (bias=False skip branch).

    # --- fold BN scale into the conv weights; one resident f32 bias input ----
    wa = (w1f.T * scale[:Ch, None]).astype(compute_dtype)                # [Ch, Cin]
    wb = (w2f.T * scale[Ch:, None]).astype(compute_dtype)                # [Ch, Cin]
    bias_in = bias.reshape(2, Ch, 1)                                     # f32

    # --- kernel operand layout (free reshapes, NCHW preserved) ---------------
    xa_in = xa.reshape(B, Cin, S).astype(compute_dtype)
    xb_in = xb.reshape(B, Cin, S).astype(compute_dtype)

    # --- tile sizing: ~target_step_elems streamed elements per grid step -----
    # Lane tile tn is a multiple of 128 (lane-dense stores) or the full spatial
    # extent; batch tile nb amortizes the ~0.35 us per-grid-step overhead.
    # Boundary blocks (cdiv grids) are handled by Pallas masking; every output
    # column depends only on the same input column, so OOB padding is inert.
    row_elems = 2 * Cin + Cout
    tn_cap = max(128, (target_step_elems // row_elems) // 128 * 128)
    tn = int(min(S, tn_cap, 1024))
    nb = int(max(1, min(B, max_nb, target_step_elems // (row_elems * tn))))
    grid = (pl.cdiv(B, nb), pl.cdiv(S, tn))

    out4 = pl.pallas_call(
        _skip_branch_kernel,
        out_shape=jax.ShapeDtypeStruct((B, 2, Ch, S), compute_dtype),
        grid=grid,
        in_specs=[
            pl.BlockSpec((nb, Cin, tn), lambda i, j: (i, 0, j)),   # streamed xa
            pl.BlockSpec((nb, Cin, tn), lambda i, j: (i, 0, j)),   # streamed xb
            pl.BlockSpec((Ch, Cin), lambda i, j: (0, 0)),          # resident wa
            pl.BlockSpec((Ch, Cin), lambda i, j: (0, 0)),          # resident wb
            pl.BlockSpec((2, Ch, 1), lambda i, j: (0, 0, 0)),      # resident bias
        ],
        out_specs=pl.BlockSpec((nb, 2, Ch, tn), lambda i, j: (i, 0, 0, j)),
        compiler_params=pltpu.CompilerParams(
            dimension_semantics=("parallel", "parallel")),         # v7x megacore
    )(xa_in, xb_in, wa, wb, bias_in)

    # [B, 2, Ch, S] -> [B, Cout, Ho, Wo] is a free row-major reshape (channel
    # order p*Ch + c matches torch.cat([a, b], dim=1)).  No transpose.
    return out4.reshape(B, Cout, Ho, Wo)


def _reference(x, w1, w2, gamma, beta, eps=1e-5):
    """Pure-JAX reference mirroring the PyTorch forward (train-mode BN)."""
    xa = x[:, :, ::2, ::2]
    xb = x[:, :, 1::2, 1::2]
    a = jnp.einsum("bchw,co->bohw", xa, w1)
    b = jnp.einsum("bchw,co->bohw", xb, w2)
    y = jnp.concatenate([a, b], axis=1)
    mean = jnp.mean(y, axis=(0, 2, 3), keepdims=True)
    var = jnp.mean((y - mean) ** 2, axis=(0, 2, 3), keepdims=True)
    g = gamma.reshape(1, -1, 1, 1)
    bt = beta.reshape(1, -1, 1, 1)
    return (y - mean) / jnp.sqrt(var + eps) * g + bt


if __name__ == "__main__":
    # Small shapes consistent with the module: B=2, Cin=4, H=W=16, Cout=8.
    B, Cin, H, W = 2, 4, 16, 16
    Ch = 4                      # each branch's conv outputs Cout//2 channels
    key = jax.random.PRNGKey(0)
    kx, k1, k2, kg, kb = jax.random.split(key, 5)

    x = jax.random.normal(kx, (B, Cin, H, W), dtype=jnp.float32)
    # PyTorch Conv2d weights are [Cout//2, Cin, 1, 1]; kernel uses [Cin, Cout//2].
    w1_torch = jax.random.normal(k1, (Ch, Cin, 1, 1), dtype=jnp.float32) * 0.1
    w2_torch = jax.random.normal(k2, (Ch, Cin, 1, 1), dtype=jnp.float32) * 0.1
    w1 = jnp.transpose(w1_torch[:, :, 0, 0], (1, 0))   # [Cin, Ch]
    w2 = jnp.transpose(w2_torch[:, :, 0, 0], (1, 0))   # [Cin, Ch]
    gamma = 1.0 + 0.1 * jax.random.normal(kg, (2 * Ch,), dtype=jnp.float32)
    beta = 0.1 * jax.random.normal(kb, (2 * Ch,), dtype=jnp.float32)

    ref = _reference(x, w1, w2, gamma, beta)

    # Exact-precision path (f32 activations/weights).
    out_f32 = jax.block_until_ready(
        skip_branch_forward(x, w1, w2, gamma, beta, compute_dtype=jnp.float32))
    assert out_f32.shape == (B, 2 * Ch, H // 2, W // 2), out_f32.shape
    err32 = float(jnp.max(jnp.abs(out_f32 - ref)))
    assert err32 < 2e-3, err32

    # Default fast path (bf16 activations/weights, f32 MXU accumulation).
    out_bf16 = jax.block_until_ready(skip_branch_forward(x, w1, w2, gamma, beta))
    assert out_bf16.shape == (B, 2 * Ch, H // 2, W // 2), out_bf16.shape
    assert out_bf16.dtype == jnp.bfloat16
    err16 = float(jnp.max(jnp.abs(out_bf16.astype(jnp.float32) - ref)))
    assert err16 < 1.5e-1, err16

    print("KERNEL_OK")
</pallas_src>

<mosaic_0001>
module attributes {stable_mosaic.version = 11 : i64} {
  func.func @_skip_branch_kernel(%arg0: i32, %arg1: i32, %arg2: memref<2x4x64xf32, #tpu.memory_space<vmem>>, %arg3: memref<2x4x64xf32, #tpu.memory_space<vmem>>, %arg4: memref<4x4xf32, #tpu.memory_space<vmem>>, %arg5: memref<4x4xf32, #tpu.memory_space<vmem>>, %arg6: memref<2x4x1xf32, #tpu.memory_space<vmem>>, %arg7: memref<2x2x4x64xf32, #tpu.memory_space<vmem>>) attributes {dimension_semantics = [#tpu.dimension_semantics<parallel>, #tpu.dimension_semantics<parallel>], iteration_bounds = array<i64: 1, 1>, scalar_prefetch = 0 : i64, scratch_operands = 0 : i64, tpu.core_type = #tpu.core_type<tc>, window_params = [{transform_indices = @transform_0, window_bounds = array<i64: 2, 4, 64>}, {transform_indices = @transform_1, window_bounds = array<i64: 2, 4, 64>}, {pipeline_mode = #tpu.pipeline_mode<synchronous>, transform_indices = @transform_2, window_bounds = array<i64: 4, 4>}, {pipeline_mode = #tpu.pipeline_mode<synchronous>, transform_indices = @transform_3, window_bounds = array<i64: 4, 4>}, {pipeline_mode = #tpu.pipeline_mode<synchronous>, transform_indices = @transform_4, window_bounds = array<i64: 2, 4, 1>}, {transform_indices = @transform_5, window_bounds = array<i64: 2, 2, 4, 64>}]} {
    %c0 = arith.constant 0 : index
    %c0_0 = arith.constant 0 : index
    %0 = vector.load %arg4[%c0, %c0_0] : memref<4x4xf32, #tpu.memory_space<vmem>>, vector<4x4xf32>
    %c0_1 = arith.constant 0 : index
    %c0_2 = arith.constant 0 : index
    %1 = vector.load %arg5[%c0_1, %c0_2] : memref<4x4xf32, #tpu.memory_space<vmem>>, vector<4x4xf32>
    %c0_3 = arith.constant 0 : index
    %c0_4 = arith.constant 0 : index
    %c0_5 = arith.constant 0 : index
    %2 = vector.load %arg6[%c0_3, %c0_4, %c0_5] : memref<2x4x1xf32, #tpu.memory_space<vmem>>, vector<1x4x1xf32>
    %3 = vector.shape_cast %2 : vector<1x4x1xf32> to vector<4x1xf32>
    %c1 = arith.constant 1 : index
    %c0_6 = arith.constant 0 : index
    %c0_7 = arith.constant 0 : index
    %4 = vector.load %arg6[%c1, %c0_6, %c0_7] : memref<2x4x1xf32, #tpu.memory_space<vmem>>, vector<1x4x1xf32>
    %5 = vector.shape_cast %4 : vector<1x4x1xf32> to vector<4x1xf32>
    %c0_8 = arith.constant 0 : index
    %c0_9 = arith.constant 0 : index
    %c0_10 = arith.constant 0 : index
    %6 = vector.load %arg2[%c0_8, %c0_9, %c0_10] : memref<2x4x64xf32, #tpu.memory_space<vmem>>, vector<1x4x64xf32>
    %7 = vector.shape_cast %6 : vector<1x4x64xf32> to vector<4x64xf32>
    %cst = arith.constant dense<0.000000e+00> : vector<4x64xf32>
    %8 = tpu.matmul %0, %7, %cst {dimension_numbers = #tpu.dot_dimension_numbers<[1], [0], [0], [1], [0, 0, 1, 1], [], []>} : vector<4x4xf32>, vector<4x64xf32>, vector<4x64xf32> -> vector<4x64xf32>
    %c0_11 = arith.constant 0 : index
    %c0_12 = arith.constant 0 : index
    %c0_13 = arith.constant 0 : index
    %9 = vector.load %arg3[%c0_11, %c0_12, %c0_13] : memref<2x4x64xf32, #tpu.memory_space<vmem>>, vector<1x4x64xf32>
    %10 = vector.shape_cast %9 : vector<1x4x64xf32> to vector<4x64xf32>
    %cst_14 = arith.constant dense<0.000000e+00> : vector<4x64xf32>
    %11 = tpu.matmul %1, %10, %cst_14 {dimension_numbers = #tpu.dot_dimension_numbers<[1], [0], [0], [1], [0, 0, 1, 1], [], []>} : vector<4x4xf32>, vector<4x64xf32>, vector<4x64xf32> -> vector<4x64xf32>
    %12 = vector.broadcast %3 : vector<4x1xf32> to vector<4x64xf32>
    %13 = arith.addf %8, %12 : vector<4x64xf32>
    %c0_15 = arith.constant 0 : index
    %c0_16 = arith.constant 0 : index
    %c0_17 = arith.constant 0 : index
    %c0_18 = arith.constant 0 : index
    %14 = vector.load %arg7[%c0_15, %c0_16, %c0_17, %c0_18] : memref<2x2x4x64xf32, #tpu.memory_space<vmem>>, vector<1x1x4x64xf32>
    %15 = vector.shape_cast %14 : vector<1x1x4x64xf32> to vector<4x64xf32>
    %16 = vector.shape_cast %13 : vector<4x64xf32> to vector<1x1x4x64xf32>
    tpu.vector_store %arg7[%c0_15, %c0_16, %c0_17, %c0_18], %16 {strides = array<i32>} : memref<2x2x4x64xf32, #tpu.memory_space<vmem>>, vector<1x1x4x64xf32>,
    %17 = vector.broadcast %5 : vector<4x1xf32> to vector<4x64xf32>
    %18 = arith.addf %11, %17 : vector<4x64xf32>
    %c0_19 = arith.constant 0 : index
    %c1_20 = arith.constant 1 : index
    %c0_21 = arith.constant 0 : index
    %c0_22 = arith.constant 0 : index
    %19 = vector.load %arg7[%c0_19, %c1_20, %c0_21, %c0_22] : memref<2x2x4x64xf32, #tpu.memory_space<vmem>>, vector<1x1x4x64xf32>
    %20 = vector.shape_cast %19 : vector<1x1x4x64xf32> to vector<4x64xf32>
    %21 = vector.shape_cast %18 : vector<4x64xf32> to vector<1x1x4x64xf32>
    tpu.vector_store %arg7[%c0_19, %c1_20, %c0_21, %c0_22], %21 {strides = array<i32>} : memref<2x2x4x64xf32, #tpu.memory_space<vmem>>, vector<1x1x4x64xf32>,
    %c1_23 = arith.constant 1 : index
    %c0_24 = arith.constant 0 : index
    %c0_25 = arith.constant 0 : index
    %22 = vector.load %arg2[%c1_23, %c0_24, %c0_25] : memref<2x4x64xf32, #tpu.memory_space<vmem>>, vector<1x4x64xf32>
    %23 = vector.shape_cast %22 : vector<1x4x64xf32> to vector<4x64xf32>
    %cst_26 = arith.constant dense<0.000000e+00> : vector<4x64xf32>
    %24 = tpu.matmul %0, %23, %cst_26 {dimension_numbers = #tpu.dot_dimension_numbers<[1], [0], [0], [1], [0, 0, 1, 1], [], []>} : vector<4x4xf32>, vector<4x64xf32>, vector<4x64xf32> -> vector<4x64xf32>
    %c1_27 = arith.constant 1 : index
    %c0_28 = arith.constant 0 : index
    %c0_29 = arith.constant 0 : index
    %25 = vector.load %arg3[%c1_27, %c0_28, %c0_29] : memref<2x4x64xf32, #tpu.memory_space<vmem>>, vector<1x4x64xf32>
    %26 = vector.shape_cast %25 : vector<1x4x64xf32> to vector<4x64xf32>
    %cst_30 = arith.constant dense<0.000000e+00> : vector<4x64xf32>
    %27 = tpu.matmul %1, %26, %cst_30 {dimension_numbers = #tpu.dot_dimension_numbers<[1], [0], [0], [1], [0, 0, 1, 1], [], []>} : vector<4x4xf32>, vector<4x64xf32>, vector<4x64xf32> -> vector<4x64xf32>
    %28 = vector.broadcast %3 : vector<4x1xf32> to vector<4x64xf32>
    %29 = arith.addf %24, %28 : vector<4x64xf32>
    %c1_31 = arith.constant 1 : index
    %c0_32 = arith.constant 0 : index
    %c0_33 = arith.constant 0 : index
    %c0_34 = arith.constant 0 : index
    %30 = vector.load %arg7[%c1_31, %c0_32, %c0_33, %c0_34] : memref<2x2x4x64xf32, #tpu.memory_space<vmem>>, vector<1x1x4x64xf32>
    %31 = vector.shape_cast %30 : vector<1x1x4x64xf32> to vector<4x64xf32>
    %32 = vector.shape_cast %29 : vector<4x64xf32> to vector<1x1x4x64xf32>
    tpu.vector_store %arg7[%c1_31, %c0_32, %c0_33, %c0_34], %32 {strides = array<i32>} : memref<2x2x4x64xf32, #tpu.memory_space<vmem>>, vector<1x1x4x64xf32>,
    %33 = vector.broadcast %5 : vector<4x1xf32> to vector<4x64xf32>
    %34 = arith.addf %27, %33 : vector<4x64xf32>
    %c1_35 = arith.constant 1 : index
    %c1_36 = arith.constant 1 : index
    %c0_37 = arith.constant 0 : index
    %c0_38 = arith.constant 0 : index
    %35 = vector.load %arg7[%c1_35, %c1_36, %c0_37, %c0_38] : memref<2x2x4x64xf32, #tpu.memory_space<vmem>>, vector<1x1x4x64xf32>
    %36 = vector.shape_cast %35 : vector<1x1x4x64xf32> to vector<4x64xf32>
    %37 = vector.shape_cast %34 : vector<4x64xf32> to vector<1x1x4x64xf32>
    tpu.vector_store %arg7[%c1_35, %c1_36, %c0_37, %c0_38], %37 {strides = array<i32>} : memref<2x2x4x64xf32, #tpu.memory_space<vmem>>, vector<1x1x4x64xf32>,
    return
  }
  func.func @transform_0(%arg0: i32, %arg1: i32) -> (i32, i32, i32) {
    %c0_i32 = arith.constant 0 : i32
    %c0_i32_0 = arith.constant 0 : i32
    return %arg0, %c0_i32, %arg1 : i32, i32, i32
  }
  func.func @transform_1(%arg0: i32, %arg1: i32) -> (i32, i32, i32) {
    %c0_i32 = arith.constant 0 : i32
    %c0_i32_0 = arith.constant 0 : i32
    return %arg0, %c0_i32, %arg1 : i32, i32, i32
  }
  func.func @transform_2(%arg0: i32, %arg1: i32) -> (i32, i32) {
    %c0_i32 = arith.constant 0 : i32
    %c0_i32_0 = arith.constant 0 : i32
    %c0_i32_1 = arith.constant 0 : i32
    return %c0_i32, %c0_i32_0 : i32, i32
  }
  func.func @transform_3(%arg0: i32, %arg1: i32) -> (i32, i32) {
    %c0_i32 = arith.constant 0 : i32
    %c0_i32_0 = arith.constant 0 : i32
    %c0_i32_1 = arith.constant 0 : i32
    return %c0_i32, %c0_i32_0 : i32, i32
  }
  func.func @transform_4(%arg0: i32, %arg1: i32) -> (i32, i32, i32) {
    %c0_i32 = arith.constant 0 : i32
    %c0_i32_0 = arith.constant 0 : i32
    %c0_i32_1 = arith.constant 0 : i32
    %c0_i32_2 = arith.constant 0 : i32
    return %c0_i32, %c0_i32_0, %c0_i32_1 : i32, i32, i32
  }
  func.func @transform_5(%arg0: i32, %arg1: i32) -> (i32, i32, i32, i32) {
    %c0_i32 = arith.constant 0 : i32
    %c0_i32_0 = arith.constant 0 : i32
    %c0_i32_1 = arith.constant 0 : i32
    return %arg0, %c0_i32, %c0_i32_0, %arg1 : i32, i32, i32, i32
  }
}

</mosaic_0001>

<bundles_post_ra>
// kernel: tpu_custom_call.1
= control target key start
LH: loop header
LB: loop body
LE: loop exit
PB: predicated region body
PF: predicated region fallthrough
CT: control target
= control target key end

     0   :  { %10 = vsyncpa [#allocation3], 0  ;;  %s572_s0 = inlined_call_operand.vmem [shape: f32[2,4,64], index: 0, kind: input, shape index: {}]   ;;  %s573_s1 = inlined_call_operand.hbm [shape: f32[2,4,64], index: 1, kind: input, shape index: {}]   ;;  %s574_s2 = inlined_call_operand.vmem [shape: f32[4,4], index: 2, kind: input, shape index: {}]   ;;  %s575_s3 = inlined_call_operand.vmem [shape: f32[4,4], index: 3, kind: input, shape index: {}]   ;;  %s576_s4 = inlined_call_operand.vmem [shape: f32[2,4,1], index: 4, kind: input, shape index: {}]   ;;  %s577_s5 = inlined_call_operand.hbm [shape: f32[2,2,4,64], index: 5, kind: output, shape index: {}]  }
   0x1   :  { %11 = vsyncpa [#allocation4], 0  ;;  %s475_s18 = smov [#allocation2]   ;;  %s427_s22 = scalar_lea.hbm %s573_s1, 128 }
   0x2   :  { %s19_s19 = sshll.u32 %s475_s18, 4  ;;  %p428_p0 = scmp.ne.s32.totalorder %s573_s1, %s427_s22  ;;  %s20_s19 = int_to_ptr.vmem [resolvable:$true] %s19_s19 }
   0x3   :  { %p431_p1 = scmp.lt.u32.totalorder %s427_s22, %s573_s1 }
   0x5   :  { %p433_p2 = pnand %p431_p1, %p428_p0 }
   0x7   :  { %436 = shalt.err (!%p433_p2)
}
   0x8   :  { %s437_s27 = scalar_lea.vmem %s20_s19, 128  ;;  %p442_p4 = scmp.lt.s32.totalorder %s20_s19, %s20_s19 }
   0x9   :  { %p438_p3 = scmp.ne.s32.totalorder %s20_s19, %s437_s27  ;;  %p443_p5 = scmp.lt.s32.totalorder %s437_s27, %s437_s27 }
   0xb   :  { %p444_p6 = por %p443_p5, %p442_p4 }
   0xd   :  { %p445_p7 = pnand %p444_p6, %p438_p3 }
   0xf   :  { %448 = shalt.err (!%p445_p7)
}
  0x10   :  { %s476_s28 = smov 64   ;;  %s477_s29 = smov 4  }
  0x11   :  { %25 = dma.hbm_to_vmem [thread:$0]  %s573_s1, 128, %s20_s19, [#allocation3], %s476_s28, %s476_s28, %s477_s29  }
  0x12   :  { %471 = dma.done.wait [#allocation3], 128  }
  0x13   :  { %472 = vsyncadd [#allocation3], 4294967168  ;;  %v478_v0 = vmov 0.0   ;;  %vm479_vm0 = vmmov 0   ;;  %v480_v1 = vmov 0   ;;  %vm51_vm1 = vcmask 1043456  }
  0x14   :  { %399 = vmatprep.subr.mxu0 %v478_v0  ;;  %404 = vmatprep.subr.mxu1 %v478_v0  ;;  %vm47_vm2 = vcmask 31744   ;;  %v40_v2 = vld [vmem:[%s572_s0] sm:$0xf]  ;;  %v386_v6 = vld [vmem:[%s572_s0 + $0x4] sm:$0xf]  ;;  %vm125_vm3 = vcmask 519168  }
  0x15   :  { %401 = vmatprep.mubr.msk.f32.mxu0 %vm479_vm0, %v478_v0  ;;  %406 = vmatprep.mubr.msk.f32.mxu1 %vm479_vm0, %v478_v0  ;;  %v41_v3 = vld [vmem:[#allocation2] sm:$0xf]  ;;  %v213_v7 = vld [vmem:[#allocation2 + $0x4] sm:$0xf]  ;;  %s481_s15 = smov [#allocation5]  }
  0x16   :  { %426 = vset.pattern.permute.xlu0 %v480_v1  ;;  %v35_v4 = vld [vmem:[%s574_s2] sm:$0xf]  ;;  %400 = vmatpush3.msk.msra.mxu0 %vm51_vm1, %v40_v2  ;;  %v381_v9 = vld [vmem:[%s576_s4 + $0x4] sm:$0xf]  ;;  %s369_s16 = sshll.u32 %s481_s15, 4  ;;  %s370_s16 = int_to_ptr.vmem [resolvable:$true] %s369_s16 }
  0x17   :  { %405 = vmatpush3.msk.msra.mxu1 %vm51_vm1, %v41_v3  ;;  %v36_v5 = vld [vmem:[%s575_s3] sm:$0xf]  ;;  %402 = vmatmul.mubr.msk.f32.vlgmr.msra.gmra.mrb[0].mxu0 %vm47_vm2, %v35_v4  ;;  %p454_p9 = scmp.lt.s32.totalorder %s370_s16, %s370_s16 }
  0x18   :  { %407 = vmatmul.mubr.msk.f32.vlgmr.msra.gmra.mrb[0].mxu1 %vm47_vm2, %v36_v5  ;;  %409 = vmatprep.subr.mxu0 %v478_v0  ;;  %v37_v8 = vld [vmem:[%s576_s4] sm:$0xf]  ;;  %s449_s4 = scalar_lea.vmem %s370_s16, 256 }
  0x19   :  { %414 = vmatprep.subr.mxu1 %v478_v0  ;;  %410 = vmatpush3.msk.msra.mxu0 %vm51_vm1, %v386_v6  ;;  %p450_p8 = scmp.ne.s32.totalorder %s370_s16, %s449_s4  ;;  %p455_p10 = scmp.lt.s32.totalorder %s449_s4, %s449_s4 }
  0x1a   :  { %415 = vmatpush3.msk.msra.mxu1 %vm51_vm1, %v213_v7  ;;  %411 = vmatprep.mubr.msk.f32.mxu0 %vm479_vm0, %v478_v0 }
  0x1b   :  { %416 = vmatprep.mubr.msk.f32.mxu1 %vm479_vm0, %v478_v0  ;;  %412 = vmatmul.mubr.msk.f32.vlgmr.msra.gmra.mrb[2].mxu0 %vm47_vm2, %v35_v4  ;;  %p456_p11 = por %p455_p10, %p454_p9 }
  0x1c   :  { %417 = vmatmul.mubr.msk.f32.vlgmr.msra.gmra.mrb[2].mxu1 %vm47_vm2, %v36_v5  ;;  %44 = vperm.xlu0 %426, %v37_v8  }
  0x1d   :  { %p457_p12 = pnand %p456_p11, %p450_p8 }
  0x20   :  { %129 = vperm.xlu0 %426, %v381_v9  }
  0x9b   :  { %v45_v10 = vpop.permute.xlu0 %44 }
  0x9f   :  { %v130_v11 = vpop.permute.xlu0 %129 }
  0xea   :  { %v121_v12 = vpop.f32.mrb[0].mxu0 }
  0xeb   :  { %v204_v13 = vpop.f32.mrb[0].mxu1  ;;  %v122_v14 = vadd.f32 %v121_v12, %v45_v10  ;;  %v403_v16 = vpop.f32.mrb[1].mxu0 }
  0xec   :  { %v205_v15 = vadd.f32 %v204_v13, %v130_v11  ;;  %v408_v17 = vpop.f32.mrb[1].mxu1 }
  0xed   :  { %126 = vst.msk [vmem:[#allocation5] sm:$0xf] %vm125_vm3, %v122_v14 }
  0xee   :  { %209 = vst.msk [vmem:[#allocation5 + $0x4] sm:$0xf] %vm125_vm3, %v205_v15  ;;  %v283_v18 = vpop.f32.mrb[2].mxu0 }
  0xef   :  { %v358_v19 = vpop.f32.mrb[2].mxu1  ;;  %v284_v20 = vadd.f32 %v283_v18, %v45_v10  ;;  %v413_v22 = vpop.f32.mrb[3].mxu0 }
  0xf0   :  { %v359_v21 = vadd.f32 %v358_v19, %v130_v11  ;;  %v418_v23 = vpop.f32.mrb[3].mxu1 }
  0xf1   :  { %288 = vst.msk [vmem:[#allocation5 + $0x8] sm:$0xf] %vm125_vm3, %v284_v20 }
  0xf2   :  { %363 = vst.msk [vmem:[#allocation5 + $0xc] sm:$0xf] %vm125_vm3, %v359_v21 }
  0xf3   :  { %460 = shalt.err (!%p457_p12)
}
  0xf4   :  { %s461_s19 = scalar_lea.hbm %s577_s5, 256 }
  0xf5   :  { %p462_p13 = scmp.ne.s32.totalorder %s577_s5, %s461_s19  ;;  %p465_p0 = scmp.lt.u32.totalorder %s461_s19, %s577_s5 }
  0xf7   :  { %p467_p1 = pnand %p465_p0, %p462_p13 }
  0xf9   :  { %470 = shalt.err (!%p467_p1)
}
  0xfa   :  { %375 = dma.vmem_to_hbm [thread:$0]  %s370_s16, 256, %s577_s5, [#allocation4], %s476_s28, %s476_s28, %s477_s29  }
  0xfb   :  { %473 = dma.done.wait [#allocation4], 256  }
  0xfc   :  { %474 = vsyncadd [#allocation4], 4294967040 }
  0xfd   :  { %379 = vsyncpa [#allocation3], 1 }
  0xfe   :  { %380 = vsyncpa [#allocation4], 1 }

</bundles_post_ra>
